<compile_context>
chip_gen: v7x
topology: tpu7x:2x2x1
jax: 0.10.0
libtpu: 0.0.40
codegen_flags: <defaults>
</compile_context>

<pallas_src>
import functools
import math

import jax
import jax.numpy as jnp
from jax.experimental import pallas as pl
from jax.experimental.pallas import tpu as pltpu

_NEG_INF = -1e30  # Python float -> lowered as a literal (no captured jax.Array constants)


def _round_up(x, m):
    return (x + m - 1) // m * m


def _pad2d(a, rows, cols):
    pr, pc = rows - a.shape[0], cols - a.shape[1]
    if pr or pc:
        a = jnp.pad(a, ((0, pr), (0, pc)))
    return a


def _masked_log_softmax(z, col_valid):
    """log_softmax along axis 1, treating invalid (padded) lanes as -inf."""
    zm = jnp.where(col_valid, z, _NEG_INF)
    m = jnp.max(zm, axis=1, keepdims=True)
    zs = zm - m
    denom = jnp.sum(jnp.where(col_valid, jnp.exp(zs), 0.0), axis=1, keepdims=True)
    return zs - jnp.log(denom)


def _ce_rows(logits, labels, col, col_valid):
    """Per-row cross-entropy with integer labels (labels shape [tm,1]) -> [tm,1]."""
    lsm = _masked_log_softmax(logits, col_valid)
    onehot = jnp.where(jnp.logical_and(col == labels, col_valid), 1.0, 0.0)
    return -jnp.sum(onehot * lsm, axis=1, keepdims=True)


def _write_partials(loss_ref, base_sum, d_sum):
    """Write [base_sum, d_sum] into lanes 0/1 of a lane-dense (8,128) output block."""
    sub = jax.lax.broadcasted_iota(jnp.int32, loss_ref.shape, 0)
    lane = jax.lax.broadcasted_iota(jnp.int32, loss_ref.shape, 1)
    first = jnp.logical_and(sub == 0, lane == 0)
    second = jnp.logical_and(sub == 0, lane == 1)
    loss_ref[...] = jnp.where(first, base_sum, jnp.where(second, d_sum, 0.0))


def _distill_kernel(labels_ref, x_ref, w_ref, b_ref, out_ref, kd_ref,
                    loss_ref, acc_ref, *, num_classes, batch, inv_tau, soft):
    # Grid is (nd, nb): D-reduction OUTER (so teacher_w streams exactly once), batch INNER.
    k = pl.program_id(0)          # D step
    i = pl.program_id(1)          # batch block
    nk = pl.num_programs(0)

    # Fold the teacher bias into the accumulator init of this batch block at the first D step.
    @pl.when(k == 0)
    def _():
        acc_ref[i] = jnp.broadcast_to(b_ref[...], acc_ref.shape[1:])

    # bf16 x bf16 -> f32 accumulation on the MXU (teacher logits for this batch block).
    acc_ref[i] = acc_ref[i] + jnp.dot(x_ref[...], w_ref[...],
                                      preferred_element_type=jnp.float32)

    # Softmax / KL / CE epilogue on the last D step only.
    @pl.when(k == nk - 1)
    def _():
        teacher = acc_ref[i]
        logits = out_ref[...].astype(jnp.float32)   # student class-token logits [tm, Kp]
        kd = kd_ref[...].astype(jnp.float32)        # student dist-token logits  [tm, Kp]
        labels = labels_ref[...]                    # int32 [tm, 1]

        tm, kp = logits.shape
        col = jax.lax.broadcasted_iota(jnp.int32, (tm, kp), 1)
        col_valid = col < num_classes
        row = i * tm + jax.lax.broadcasted_iota(jnp.int32, (tm, 1), 0)
        row_valid = (row < batch).astype(jnp.float32)

        # base criterion: CE(outputs, labels), un-normalized sum over valid rows.
        base_sum = jnp.sum(row_valid * _ce_rows(logits, labels, col, col_valid))

        if soft:
            # KL(log_softmax(kd/T) || log_softmax(teacher/T)), sum, log_target=True
            s_log = _masked_log_softmax(kd * inv_tau, col_valid)
            t_log = _masked_log_softmax(teacher * inv_tau, col_valid)
            kl = jnp.where(col_valid, jnp.exp(t_log) * (t_log - s_log), 0.0)
            d_sum = jnp.sum(row_valid * jnp.sum(kl, axis=1, keepdims=True))
        else:  # hard
            tmask = jnp.where(col_valid, teacher, _NEG_INF)
            tmax = jnp.max(tmask, axis=1, keepdims=True)
            # first index attaining the max (matches torch.argmax lowest-index tie-breaking)
            amax = jnp.min(jnp.where(tmask == tmax, col, kp), axis=1, keepdims=True)
            d_sum = jnp.sum(row_valid * _ce_rows(kd, amax, col, col_valid))

        _write_partials(loss_ref, base_sum, d_sum)


def _ce_only_kernel(labels_ref, out_ref, loss_ref, *, num_classes, batch):
    """distillation_type == 'none': base criterion only, no teacher matmul."""
    logits = out_ref[...].astype(jnp.float32)
    labels = labels_ref[...]
    tm, kp = logits.shape
    col = jax.lax.broadcasted_iota(jnp.int32, (tm, kp), 1)
    col_valid = col < num_classes
    row = pl.program_id(0) * tm + jax.lax.broadcasted_iota(jnp.int32, (tm, 1), 0)
    row_valid = (row < batch).astype(jnp.float32)
    base_sum = jnp.sum(row_valid * _ce_rows(logits, labels, col, col_valid))
    _write_partials(loss_ref, base_sum, 0.0)


def prepare_teacher_params(teacher_w, teacher_b):
    """Cast/pad the static synthetic-teacher parameters once; cache the result across steps.

    teacher_w: [D, K] -> bf16 [round_up(D,128), round_up(K,128)]
    teacher_b: [K]    -> f32  [1, round_up(K,128)]
    """
    D, K = teacher_w.shape
    Dp, Kp = _round_up(D, 128), _round_up(K, 128)
    w_p = _pad2d(teacher_w.astype(jnp.bfloat16), Dp, Kp)
    b_p = _pad2d(teacher_b.astype(jnp.float32).reshape(1, -1), 1, Kp)
    return w_p, b_p


def distillation_loss(inputs, outputs, outputs_kd, labels, teacher_w, teacher_b,
                      *, distillation_type="soft", alpha=0.5, tau=2.0,
                      block_b=256, block_d=2048, vmem_limit_bytes=None):
    """Fused DeiT DistillationLoss forward.

    inputs:     [B, C, H, W]  teacher inputs (consumed flattened row-major, like .view(B,-1));
                              pass bf16 to avoid an extra cast copy.
    outputs:    [B, K]        student class-token logits
    outputs_kd: [B, K]        student dist-token logits
    labels:     [B]           integer labels for the base criterion
    teacher_w:  [D=C*H*W, K]  synthetic teacher (linear classifier) weight, or the padded bf16
                              result of prepare_teacher_params (recommended: prepare once).
    teacher_b:  [K] or [1,Kp] synthetic teacher bias (f32)
    """
    assert distillation_type in ("none", "soft", "hard")
    B, K = outputs.shape
    Kp = _round_up(K, 128)

    block_b = max(16, _round_up(block_b, 16))
    tm = min(block_b, _round_up(B, 16))          # bf16 sublane packing: tm a multiple of 16
    Bp = _round_up(B, tm)
    nb = Bp // tm

    labels2d = _pad2d(labels.astype(jnp.int32).reshape(B, 1), Bp, 1)
    # student logits are streamed as bf16 (halves traffic + VMEM); epilogue math stays f32.
    out_p = _pad2d(outputs.astype(jnp.bfloat16), Bp, Kp)

    cp = {}
    if vmem_limit_bytes is not None:
        cp["vmem_limit_bytes"] = int(vmem_limit_bytes)

    if distillation_type == "none":
        partials = pl.pallas_call(
            functools.partial(_ce_only_kernel, num_classes=K, batch=B),
            grid_spec=pltpu.PrefetchScalarGridSpec(
                num_scalar_prefetch=0,
                grid=(nb,),
                in_specs=[pl.BlockSpec((tm, 1), lambda i: (i, 0)),
                          pl.BlockSpec((tm, Kp), lambda i: (i, 0))],
                out_specs=pl.BlockSpec((8, 128), lambda i: (i, 0)),
            ),
            out_shape=jax.ShapeDtypeStruct((nb * 8, 128), jnp.float32),
            compiler_params=pltpu.CompilerParams(
                dimension_semantics=("parallel",), **cp),
        )(labels2d, out_p)
        return jnp.sum(partials, axis=0)[0] / B

    D = math.prod(inputs.shape[1:])
    Dp = _round_up(D, 128)

    # Prefer a D tile that divides the 128-padded D exactly (no x/W padding copy along D);
    # otherwise fall back to padding up to a tile multiple.
    tk = min(_round_up(block_d, 128), Dp)
    t = tk
    while Dp % t:
        t -= 128
    if 2 * t >= tk:
        tk = t
    Dp = _round_up(Dp, tk)
    nd = Dp // tk

    # Teacher params: reuse prepared (bf16, lane-padded) arrays if the caller cached them.
    if (teacher_w.dtype == jnp.bfloat16 and teacher_w.ndim == 2
            and teacher_w.shape[1] == Kp and teacher_w.shape[0] % 128 == 0):
        w_p = teacher_w
        b_p = _pad2d(teacher_b.astype(jnp.float32).reshape(1, -1), 1, Kp)
    else:
        w_p, b_p = prepare_teacher_params(teacher_w, teacher_b)
    w_p = _pad2d(w_p, Dp, Kp)

    # x: bf16 MXU streaming; skip the cast if the caller already holds bf16 activations.
    # (For f32 inputs this materializes one bf16 copy; CompilerParams(allow_input_fusion=...)
    #  could fuse the cast into the pallas_call if that copy ever dominates.)
    x = inputs.reshape(B, D)
    if x.dtype != jnp.bfloat16:
        x = x.astype(jnp.bfloat16)
    x_p = _pad2d(x, Bp, Dp)

    kd_p = _pad2d(outputs_kd.astype(jnp.bfloat16), Bp, Kp)

    kernel = functools.partial(_distill_kernel, num_classes=K, batch=B,
                               inv_tau=float(1.0 / float(tau)),
                               soft=(distillation_type == "soft"))

    # Student logits / dist logits are only needed in the epilogue: walk their batch blocks
    # only on the last D step so they are fetched ~once instead of nd times.
    def last_step_map(k, i, nd=nd):
        return (jnp.where(k == nd - 1, i, 0), 0)

    partials = pl.pallas_call(
        kernel,
        grid_spec=pltpu.PrefetchScalarGridSpec(
            num_scalar_prefetch=0,
            grid=(nd, nb),                                      # D outer -> W streamed once
            in_specs=[
                pl.BlockSpec((tm, 1), lambda k, i: (i, 0)),     # labels (int32, tiny)
                pl.BlockSpec((tm, tk), lambda k, i: (i, k)),    # x (bf16), each tile once
                pl.BlockSpec((tk, Kp), lambda k, i: (k, 0)),    # teacher_w (bf16), streamed once
                pl.BlockSpec((1, Kp), lambda k, i: (0, 0)),     # teacher_b (f32)
                pl.BlockSpec((tm, Kp), last_step_map),          # student class logits (bf16)
                pl.BlockSpec((tm, Kp), last_step_map),          # student dist  logits (bf16)
            ],
            out_specs=pl.BlockSpec((8, 128), lambda k, i: (i, 0)),
            # Whole-batch teacher-logit accumulator (Bp*Kp*4 bytes), indexed by the inner block.
            scratch_shapes=[pltpu.VMEM((nb, tm, Kp), jnp.float32)],
        ),
        out_shape=jax.ShapeDtypeStruct((nb * 8, 128), jnp.float32),
        # D is a carried reduction and must be "arbitrary"; the batch axis is kept "arbitrary"
        # too because it sits after the reduction axis in this W-reuse-optimal grid order.
        compiler_params=pltpu.CompilerParams(
            dimension_semantics=("arbitrary", "arbitrary"), **cp),
    )(labels2d, x_p, w_p, b_p, out_p, kd_p)

    sums = jnp.sum(partials, axis=0)                 # per-B-block partials -> totals
    base_loss = sums[0] / B
    if distillation_type == "soft":
        dloss = sums[1] * (float(tau) * float(tau) / (B * K))
    else:
        dloss = sums[1] / B
    return base_loss * (1.0 - alpha) + dloss * alpha


if __name__ == "__main__":
    key = jax.random.PRNGKey(0)
    B, C, H, W, K = 2, 4, 16, 16, 16
    D = C * H * W
    alpha, tau = 0.5, 2.0

    k1, k2, k3, k4, k5, k6 = jax.random.split(key, 6)
    inputs = jax.random.normal(k1, (B, C, H, W), jnp.float32)       # teacher inputs (NCHW)
    outputs = jax.random.normal(k2, (B, K), jnp.float32)            # student class-token logits
    outputs_kd = jax.random.normal(k3, (B, K), jnp.float32)         # student dist-token logits
    labels = jax.random.randint(k4, (B,), 0, K, dtype=jnp.int32)    # ground-truth classes
    # deterministic synthetic teacher parameters (linear classifier over flattened input)
    teacher_w = jax.random.normal(k5, (D, K), jnp.float32) * 0.02
    teacher_b = jax.random.normal(k6, (K,), jnp.float32) * 0.01

    # Static teacher: cast/pad once, reuse across calls (avoids a per-call convert+pad of W).
    w_prep, b_prep = prepare_teacher_params(teacher_w, teacher_b)

    losses = {}
    for kind in ("soft", "hard", "none"):
        losses[kind] = jax.block_until_ready(
            distillation_loss(inputs, outputs, outputs_kd, labels, w_prep, b_prep,
                              distillation_type=kind, alpha=alpha, tau=tau))

    # ---- plain-JAX reference. Operands are bf16-rounded to mirror the kernel's intentional
    #      bf16 MXU / bf16 logit streaming (all math/accumulation stays f32 in both paths). ----
    xb = inputs.reshape(B, D).astype(jnp.bfloat16).astype(jnp.float32)
    wb = teacher_w.astype(jnp.bfloat16).astype(jnp.float32)
    ob = outputs.astype(jnp.bfloat16).astype(jnp.float32)
    kb = outputs_kd.astype(jnp.bfloat16).astype(jnp.float32)
    teacher_ref = xb @ wb + teacher_b
    base_ref = -jnp.mean(jax.nn.log_softmax(ob, axis=1)[jnp.arange(B), labels])
    s_log = jax.nn.log_softmax(kb / tau, axis=1)
    t_log = jax.nn.log_softmax(teacher_ref / tau, axis=1)
    soft_ref = jnp.sum(jnp.exp(t_log) * (t_log - s_log)) * (tau * tau) / (B * K)
    hard_ref = -jnp.mean(jax.nn.log_softmax(kb, axis=1)[
        jnp.arange(B), jnp.argmax(teacher_ref, axis=1)])
    refs = {
        "soft": base_ref * (1 - alpha) + soft_ref * alpha,
        "hard": base_ref * (1 - alpha) + hard_ref * alpha,
        "none": base_ref,
    }

    for kind in ("soft", "hard", "none"):
        assert jnp.isfinite(losses[kind]), (kind, losses[kind])
        assert jnp.allclose(losses[kind], refs[kind], rtol=1e-2, atol=1e-2), (
            kind, losses[kind], refs[kind])
    print("KERNEL_OK")
</pallas_src>

<mosaic_0001>
module attributes {stable_mosaic.version = 11 : i64} {
  func.func @_distill_kernel(%arg0: i32, %arg1: i32, %arg2: memref<16x1xi32, #tpu.memory_space<vmem>>, %arg3: memref<16x1024xbf16, #tpu.memory_space<vmem>>, %arg4: memref<1024x128xbf16, #tpu.memory_space<vmem>>, %arg5: memref<1x128xf32, #tpu.memory_space<vmem>>, %arg6: memref<16x128xbf16, #tpu.memory_space<vmem>>, %arg7: memref<16x128xbf16, #tpu.memory_space<vmem>>, %arg8: memref<8x128xf32, #tpu.memory_space<vmem>>, %arg9: memref<1x16x128xf32, #tpu.memory_space<vmem>>) attributes {dimension_semantics = [#tpu.dimension_semantics<arbitrary>, #tpu.dimension_semantics<arbitrary>], iteration_bounds = array<i64: 1, 1>, scalar_prefetch = 0 : i64, scratch_operands = 1 : i64, tpu.core_type = #tpu.core_type<tc>, window_params = [{transform_indices = @transform_0, window_bounds = array<i64: 16, 1>}, {transform_indices = @transform_1, window_bounds = array<i64: 16, 1024>}, {transform_indices = @transform_2, window_bounds = array<i64: 1024, 128>}, {pipeline_mode = #tpu.pipeline_mode<synchronous>, transform_indices = @transform_3, window_bounds = array<i64: 1, 128>}, {transform_indices = @transform_4, window_bounds = array<i64: 16, 128>}, {transform_indices = @transform_5, window_bounds = array<i64: 16, 128>}, {transform_indices = @transform_6, window_bounds = array<i64: 8, 128>}]} {
    %c0_i32 = arith.constant 0 : i32
    %0 = arith.cmpi eq, %arg0, %c0_i32 : i32
    %1 = arith.extui %0 : i1 to i32
    %c0_i32_0 = arith.constant 0 : i32
    %2 = arith.cmpi ne, %1, %c0_i32_0 : i32
    scf.if %2 {
      %c0_10 = arith.constant 0 : index
      %c0_11 = arith.constant 0 : index
      %17 = vector.load %arg5[%c0_10, %c0_11] : memref<1x128xf32, #tpu.memory_space<vmem>>, vector<1x128xf32>
      %18 = vector.shape_cast %17 : vector<1x128xf32> to vector<1x128xf32>
      %19 = vector.broadcast %18 : vector<1x128xf32> to vector<16x128xf32>
      %20 = arith.index_cast %arg1 : i32 to index
      %c0_12 = arith.constant 0 : index
      %c0_13 = arith.constant 0 : index
      %21 = vector.load %arg9[%20, %c0_12, %c0_13] : memref<1x16x128xf32, #tpu.memory_space<vmem>>, vector<1x16x128xf32>
      %22 = vector.shape_cast %21 : vector<1x16x128xf32> to vector<16x128xf32>
      %23 = vector.shape_cast %19 : vector<16x128xf32> to vector<1x16x128xf32>
      tpu.vector_store %arg9[%20, %c0_12, %c0_13], %23 {strides = array<i32>} : memref<1x16x128xf32, #tpu.memory_space<vmem>>, vector<1x16x128xf32>,
    } else {
    }
    %3 = arith.index_cast %arg1 : i32 to index
    %c0 = arith.constant 0 : index
    %c0_1 = arith.constant 0 : index
    %4 = vector.load %arg9[%3, %c0, %c0_1] : memref<1x16x128xf32, #tpu.memory_space<vmem>>, vector<1x16x128xf32>
    %5 = vector.shape_cast %4 : vector<1x16x128xf32> to vector<16x128xf32>
    %c0_2 = arith.constant 0 : index
    %c0_3 = arith.constant 0 : index
    %6 = vector.load %arg3[%c0_2, %c0_3] : memref<16x1024xbf16, #tpu.memory_space<vmem>>, vector<16x1024xbf16>
    %c0_4 = arith.constant 0 : index
    %c0_5 = arith.constant 0 : index
    %7 = vector.load %arg4[%c0_4, %c0_5] : memref<1024x128xbf16, #tpu.memory_space<vmem>>, vector<1024x128xbf16>
    %cst = arith.constant dense<0.000000e+00> : vector<16x128xf32>
    %8 = tpu.matmul %6, %7, %cst {dimension_numbers = #tpu.dot_dimension_numbers<[1], [0], [0], [1], [0, 0, 1, 1], [], []>} : vector<16x1024xbf16>, vector<1024x128xbf16>, vector<16x128xf32> -> vector<16x128xf32>
    %9 = arith.addf %5, %8 : vector<16x128xf32>
    %10 = arith.index_cast %arg1 : i32 to index
    %c0_6 = arith.constant 0 : index
    %c0_7 = arith.constant 0 : index
    %11 = vector.load %arg9[%10, %c0_6, %c0_7] : memref<1x16x128xf32, #tpu.memory_space<vmem>>, vector<1x16x128xf32>
    %12 = vector.shape_cast %11 : vector<1x16x128xf32> to vector<16x128xf32>
    %13 = vector.shape_cast %9 : vector<16x128xf32> to vector<1x16x128xf32>
    tpu.vector_store %arg9[%10, %c0_6, %c0_7], %13 {strides = array<i32>} : memref<1x16x128xf32, #tpu.memory_space<vmem>>, vector<1x16x128xf32>,
    %c0_i32_8 = arith.constant 0 : i32
    %14 = arith.cmpi eq, %arg0, %c0_i32_8 : i32
    %15 = arith.extui %14 : i1 to i32
    %c0_i32_9 = arith.constant 0 : i32
    %16 = arith.cmpi ne, %15, %c0_i32_9 : i32
    scf.if %16 {
      %17 = arith.index_cast %arg1 : i32 to index
      %c0_10 = arith.constant 0 : index
      %c0_11 = arith.constant 0 : index
      %18 = vector.load %arg9[%17, %c0_10, %c0_11] : memref<1x16x128xf32, #tpu.memory_space<vmem>>, vector<1x16x128xf32>
      %19 = vector.shape_cast %18 : vector<1x16x128xf32> to vector<16x128xf32>
      %c0_12 = arith.constant 0 : index
      %c0_13 = arith.constant 0 : index
      %20 = vector.load %arg6[%c0_12, %c0_13] : memref<16x128xbf16, #tpu.memory_space<vmem>>, vector<16x128xbf16>
      %21 = arith.extf %20 : vector<16x128xbf16> to vector<16x128xf32>
      %c0_14 = arith.constant 0 : index
      %c0_15 = arith.constant 0 : index
      %22 = vector.load %arg7[%c0_14, %c0_15] : memref<16x128xbf16, #tpu.memory_space<vmem>>, vector<16x128xbf16>
      %23 = arith.extf %22 : vector<16x128xbf16> to vector<16x128xf32>
      %c0_16 = arith.constant 0 : index
      %c0_17 = arith.constant 0 : index
      %24 = vector.load %arg2[%c0_16, %c0_17] : memref<16x1xi32, #tpu.memory_space<vmem>>, vector<16x1xi32>
      %25 = tpu.iota {dimensions = array<i32: 1>} : vector<16x128xi32>
      %c16_i32 = arith.constant 16 : i32
      %26 = vector.broadcast %c16_i32 : i32 to vector<16x128xi32>
      %27 = arith.cmpi slt, %25, %26 : vector<16x128xi32>
      %c16_i32_18 = arith.constant 16 : i32
      %28 = arith.muli %arg1, %c16_i32_18 : i32
      %29 = tpu.iota {dimensions = array<i32: 0>} : vector<16x1xi32>
      %30 = vector.broadcast %28 : i32 to vector<16x1xi32>
      %31 = arith.addi %30, %29 : vector<16x1xi32>
      %c2_i32 = arith.constant 2 : i32
      %32 = vector.broadcast %c2_i32 : i32 to vector<16x1xi32>
      %33 = arith.cmpi slt, %31, %32 : vector<16x1xi32>
      %34 = arith.extui %33 : vector<16x1xi1> to vector<16x1xi32>
      %35 = arith.sitofp %34 : vector<16x1xi32> to vector<16x1xf32>
      %cst_19 = arith.constant -1.000000e+30 : f32
      %36 = vector.broadcast %cst_19 : f32 to vector<16x128xf32>
      %37 = arith.select %27, %21, %36 : vector<16x128xi1>, vector<16x128xf32>
      %cst_20 = arith.constant dense<0xFF800000> : vector<16xf32>
      %38 = vector.multi_reduction <maximumf>, %37, %cst_20 [1] : vector<16x128xf32> to vector<16xf32>
      %39 = vector.shape_cast %38 : vector<16xf32> to vector<16x1xf32>
      %40 = vector.broadcast %39 : vector<16x1xf32> to vector<16x128xf32>
      %41 = arith.subf %37, %40 : vector<16x128xf32>
      %42 = math.exp %41 : vector<16x128xf32>
      %cst_21 = arith.constant 0.000000e+00 : f32
      %43 = vector.broadcast %cst_21 : f32 to vector<16x128xf32>
      %44 = arith.select %27, %42, %43 : vector<16x128xi1>, vector<16x128xf32>
      %cst_22 = arith.constant dense<0.000000e+00> : vector<16xf32>
      %45 = vector.multi_reduction <add>, %44, %cst_22 [1] : vector<16x128xf32> to vector<16xf32>
      %46 = vector.shape_cast %45 : vector<16xf32> to vector<16x1xf32>
      %47 = math.log %46 : vector<16x1xf32>
      %48 = vector.broadcast %47 : vector<16x1xf32> to vector<16x128xf32>
      %49 = arith.subf %41, %48 : vector<16x128xf32>
      %50 = vector.broadcast %24 : vector<16x1xi32> to vector<16x128xi32>
      %51 = arith.cmpi eq, %25, %50 : vector<16x128xi32>
      %52 = arith.andi %51, %27 : vector<16x128xi1>
      %cst_23 = arith.constant 1.000000e+00 : f32
      %cst_24 = arith.constant 0.000000e+00 : f32
      %53 = vector.broadcast %cst_23 : f32 to vector<16x128xf32>
      %54 = vector.broadcast %cst_24 : f32 to vector<16x128xf32>
      %55 = arith.select %52, %53, %54 : vector<16x128xi1>, vector<16x128xf32>
      %56 = arith.mulf %55, %49 : vector<16x128xf32>
      %cst_25 = arith.constant dense<0.000000e+00> : vector<16xf32>
      %57 = vector.multi_reduction <add>, %56, %cst_25 [1] : vector<16x128xf32> to vector<16xf32>
      %58 = vector.shape_cast %57 : vector<16xf32> to vector<16x1xf32>
      %cst_26 = arith.constant 0.000000e+00 : f32
      %59 = vector.broadcast %cst_26 : f32 to vector<16x1xf32>
      %60 = arith.subf %59, %58 : vector<16x1xf32>
      %61 = arith.mulf %35, %60 : vector<16x1xf32>
      %62 = vector.shape_cast %61 : vector<16x1xf32> to vector<1x16x1xf32>
      %cst_27 = arith.constant dense<0.000000e+00> : vector<1xf32>
      %63 = vector.multi_reduction <add>, %62, %cst_27 [1, 2] : vector<1x16x1xf32> to vector<1xf32>
      %64 = vector.shape_cast %63 : vector<1xf32> to vector<1x1x1xf32>
      %65 = vector.extract %64[0, 0, 0] : f32 from vector<1x1x1xf32>
      %cst_28 = arith.constant 5.000000e-01 : f32
      %66 = vector.broadcast %cst_28 : f32 to vector<16x128xf32>
      %67 = arith.mulf %23, %66 : vector<16x128xf32>
      %cst_29 = arith.constant -1.000000e+30 : f32
      %68 = vector.broadcast %cst_29 : f32 to vector<16x128xf32>
      %69 = arith.select %27, %67, %68 : vector<16x128xi1>, vector<16x128xf32>
      %cst_30 = arith.constant dense<0xFF800000> : vector<16xf32>
      %70 = vector.multi_reduction <maximumf>, %69, %cst_30 [1] : vector<16x128xf32> to vector<16xf32>
      %71 = vector.shape_cast %70 : vector<16xf32> to vector<16x1xf32>
      %72 = vector.broadcast %71 : vector<16x1xf32> to vector<16x128xf32>
      %73 = arith.subf %69, %72 : vector<16x128xf32>
      %74 = math.exp %73 : vector<16x128xf32>
      %cst_31 = arith.constant 0.000000e+00 : f32
      %75 = vector.broadcast %cst_31 : f32 to vector<16x128xf32>
      %76 = arith.select %27, %74, %75 : vector<16x128xi1>, vector<16x128xf32>
      %cst_32 = arith.constant dense<0.000000e+00> : vector<16xf32>
      %77 = vector.multi_reduction <add>, %76, %cst_32 [1] : vector<16x128xf32> to vector<16xf32>
      %78 = vector.shape_cast %77 : vector<16xf32> to vector<16x1xf32>
      %79 = math.log %78 : vector<16x1xf32>
      %80 = vector.broadcast %79 : vector<16x1xf32> to vector<16x128xf32>
      %81 = arith.subf %73, %80 : vector<16x128xf32>
      %cst_33 = arith.constant 5.000000e-01 : f32
      %82 = vector.broadcast %cst_33 : f32 to vector<16x128xf32>
      %83 = arith.mulf %19, %82 : vector<16x128xf32>
      %cst_34 = arith.constant -1.000000e+30 : f32
      %84 = vector.broadcast %cst_34 : f32 to vector<16x128xf32>
      %85 = arith.select %27, %83, %84 : vector<16x128xi1>, vector<16x128xf32>
      %cst_35 = arith.constant dense<0xFF800000> : vector<16xf32>
      %86 = vector.multi_reduction <maximumf>, %85, %cst_35 [1] : vector<16x128xf32> to vector<16xf32>
      %87 = vector.shape_cast %86 : vector<16xf32> to vector<16x1xf32>
      %88 = vector.broadcast %87 : vector<16x1xf32> to vector<16x128xf32>
      %89 = arith.subf %85, %88 : vector<16x128xf32>
      %90 = math.exp %89 : vector<16x128xf32>
      %cst_36 = arith.constant 0.000000e+00 : f32
      %91 = vector.broadcast %cst_36 : f32 to vector<16x128xf32>
      %92 = arith.select %27, %90, %91 : vector<16x128xi1>, vector<16x128xf32>
      %cst_37 = arith.constant dense<0.000000e+00> : vector<16xf32>
      %93 = vector.multi_reduction <add>, %92, %cst_37 [1] : vector<16x128xf32> to vector<16xf32>
      %94 = vector.shape_cast %93 : vector<16xf32> to vector<16x1xf32>
      %95 = math.log %94 : vector<16x1xf32>
      %96 = vector.broadcast %95 : vector<16x1xf32> to vector<16x128xf32>
      %97 = arith.subf %89, %96 : vector<16x128xf32>
      %98 = math.exp %97 : vector<16x128xf32>
      %99 = arith.subf %97, %81 : vector<16x128xf32>
      %100 = arith.mulf %98, %99 : vector<16x128xf32>
      %cst_38 = arith.constant 0.000000e+00 : f32
      %101 = vector.broadcast %cst_38 : f32 to vector<16x128xf32>
      %102 = arith.select %27, %100, %101 : vector<16x128xi1>, vector<16x128xf32>
      %cst_39 = arith.constant dense<0.000000e+00> : vector<16xf32>
      %103 = vector.multi_reduction <add>, %102, %cst_39 [1] : vector<16x128xf32> to vector<16xf32>
      %104 = vector.shape_cast %103 : vector<16xf32> to vector<16x1xf32>
      %105 = arith.mulf %35, %104 : vector<16x1xf32>
      %106 = vector.shape_cast %105 : vector<16x1xf32> to vector<1x16x1xf32>
      %cst_40 = arith.constant dense<0.000000e+00> : vector<1xf32>
      %107 = vector.multi_reduction <add>, %106, %cst_40 [1, 2] : vector<1x16x1xf32> to vector<1xf32>
      %108 = vector.shape_cast %107 : vector<1xf32> to vector<1x1x1xf32>
      %109 = vector.extract %108[0, 0, 0] : f32 from vector<1x1x1xf32>
      %110 = tpu.iota {dimensions = array<i32: 0>} : vector<8x128xi32>
      %111 = tpu.iota {dimensions = array<i32: 1>} : vector<8x128xi32>
      %c0_i32_41 = arith.constant 0 : i32
      %112 = vector.broadcast %c0_i32_41 : i32 to vector<8x128xi32>
      %113 = arith.cmpi eq, %110, %112 : vector<8x128xi32>
      %c0_i32_42 = arith.constant 0 : i32
      %114 = vector.broadcast %c0_i32_42 : i32 to vector<8x128xi32>
      %115 = arith.cmpi eq, %111, %114 : vector<8x128xi32>
      %116 = arith.andi %113, %115 : vector<8x128xi1>
      %c0_i32_43 = arith.constant 0 : i32
      %117 = vector.broadcast %c0_i32_43 : i32 to vector<8x128xi32>
      %118 = arith.cmpi eq, %110, %117 : vector<8x128xi32>
      %c1_i32 = arith.constant 1 : i32
      %119 = vector.broadcast %c1_i32 : i32 to vector<8x128xi32>
      %120 = arith.cmpi eq, %111, %119 : vector<8x128xi32>
      %121 = arith.andi %118, %120 : vector<8x128xi1>
      %cst_44 = arith.constant 0.000000e+00 : f32
      %122 = vector.broadcast %109 : f32 to vector<8x128xf32>
      %123 = vector.broadcast %cst_44 : f32 to vector<8x128xf32>
      %124 = arith.select %121, %122, %123 : vector<8x128xi1>, vector<8x128xf32>
      %125 = vector.broadcast %65 : f32 to vector<8x128xf32>
      %126 = arith.select %116, %125, %124 : vector<8x128xi1>, vector<8x128xf32>
      %c0_45 = arith.constant 0 : index
      %c0_46 = arith.constant 0 : index
      %127 = vector.load %arg8[%c0_45, %c0_46] : memref<8x128xf32, #tpu.memory_space<vmem>>, vector<8x128xf32>
      tpu.vector_store %arg8[%c0_45, %c0_46], %126 {strides = array<i32>} : memref<8x128xf32, #tpu.memory_space<vmem>>, vector<8x128xf32>,
    } else {
    }
    return
  }
  func.func @transform_0(%arg0: i32, %arg1: i32) -> (i32, i32) {
    %c0_i32 = arith.constant 0 : i32
    %c0_i32_0 = arith.constant 0 : i32
    return %arg1, %c0_i32 : i32, i32
  }
  func.func @transform_1(%arg0: i32, %arg1: i32) -> (i32, i32) {
    %c0_i32 = arith.constant 0 : i32
    return %arg1, %arg0 : i32, i32
  }
  func.func @transform_2(%arg0: i32, %arg1: i32) -> (i32, i32) {
    %c0_i32 = arith.constant 0 : i32
    %c0_i32_0 = arith.constant 0 : i32
    return %arg0, %c0_i32 : i32, i32
  }
  func.func @transform_3(%arg0: i32, %arg1: i32) -> (i32, i32) {
    %c0_i32 = arith.constant 0 : i32
    %c0_i32_0 = arith.constant 0 : i32
    %c0_i32_1 = arith.constant 0 : i32
    return %c0_i32, %c0_i32_0 : i32, i32
  }
  func.func @transform_4(%arg0: i32, %arg1: i32) -> (i32, i32) {
    %c0_i32 = arith.constant 0 : i32
    %0 = arith.cmpi eq, %arg0, %c0_i32 : i32
    %c0_i32_0 = arith.constant 0 : i32
    %1 = arith.select %0, %arg1, %c0_i32_0 : i32
    %c0_i32_1 = arith.constant 0 : i32
    %c0_i32_2 = arith.constant 0 : i32
    return %1, %c0_i32_1 : i32, i32
  }
  func.func @transform_5(%arg0: i32, %arg1: i32) -> (i32, i32) {
    %c0_i32 = arith.constant 0 : i32
    %0 = arith.cmpi eq, %arg0, %c0_i32 : i32
    %c0_i32_0 = arith.constant 0 : i32
    %1 = arith.select %0, %arg1, %c0_i32_0 : i32
    %c0_i32_1 = arith.constant 0 : i32
    %c0_i32_2 = arith.constant 0 : i32
    return %1, %c0_i32_1 : i32, i32
  }
  func.func @transform_6(%arg0: i32, %arg1: i32) -> (i32, i32) {
    %c0_i32 = arith.constant 0 : i32
    %c0_i32_0 = arith.constant 0 : i32
    return %arg1, %c0_i32 : i32, i32
  }
}

</mosaic_0001>

<bundles_post_ra>
// kernel: tpu_custom_call.1
= control target key start
LH: loop header
LB: loop body
LE: loop exit
PB: predicated region body
PF: predicated region fallthrough
CT: control target
= control target key end

     0   :  { %11 = vsyncpa [#allocation4], 0  ;;  %s1562_s0 = inlined_call_operand.vmem [shape: s32[16,1], index: 0, kind: input, shape index: {}]   ;;  %s1563_s1 = inlined_call_operand.hbm [shape: bf16[16,1024], index: 1, kind: input, shape index: {}]   ;;  %s1564_s2 = inlined_call_operand.hbm [shape: bf16[1024,128], index: 2, kind: input, shape index: {}]   ;;  %s1565_s3 = inlined_call_operand.vmem [shape: f32[1,128], index: 3, kind: input, shape index: {}]   ;;  %s1566_s4 = inlined_call_operand.vmem [shape: bf16[16,128], index: 4, kind: input, shape index: {}]   ;;  %s1567_s5 = inlined_call_operand.vmem [shape: bf16[16,128], index: 5, kind: input, shape index: {}]   ;;  %s1568_s6 = inlined_call_operand.hbm [shape: f32[8,128], index: 6, kind: output, shape index: {}]  }
   0x1   :  { %12 = vsyncpa [#allocation7], 0 }
   0x2   :  { %13 = vsyncpa [#allocation5], 0  ;;  %s1410_s21 = smov [#allocation3]   ;;  %s1338_s25 = scalar_lea.hbm %s1563_s1, 1024 }
   0x3   :  { %s21_s22 = sshll.u32 %s1410_s21, 4  ;;  %p1339_p0 = scmp.ne.s32.totalorder %s1563_s1, %s1338_s25  ;;  %s22_s22 = int_to_ptr.vmem [resolvable:$true] %s21_s22 }
   0x4   :  { %p1342_p1 = scmp.lt.u32.totalorder %s1338_s25, %s1563_s1 }
   0x6   :  { %p1344_p2 = pnand %p1342_p1, %p1339_p0 }
   0x8   :  { %1347 = shalt.err (!%p1344_p2)
}
   0x9   :  { %s1348_s30 = scalar_lea.vmem %s22_s22, 1024  ;;  %p1353_p4 = scmp.lt.s32.totalorder %s22_s22, %s22_s22 }
   0xa   :  { %p1349_p3 = scmp.ne.s32.totalorder %s22_s22, %s1348_s30  ;;  %p1354_p5 = scmp.lt.s32.totalorder %s1348_s30, %s1348_s30 }
   0xc   :  { %p1355_p6 = por %p1354_p5, %p1353_p4 }
   0xe   :  { %p1356_p7 = pnand %p1355_p6, %p1349_p3 }
  0x10   :  { %1359 = shalt.err (!%p1356_p7)
}
  0x11   :  { %s1411_s7 = smov 512   ;;  %s1412_s8 = smov 32  }
  0x12   :  { %27 = dma.hbm_to_vmem [thread:$0]  %s1563_s1, 1024, %s22_s22, [#allocation4], %s1411_s7, %s1411_s7, %s1412_s8  }
  0x13   :  { %s1413_s11 = smov [#allocation6]   ;;  %s1360_s15 = scalar_lea.hbm %s1564_s2, 8192 }
  0x14   :  { %s33_s12 = sshll.u32 %s1413_s11, 4  ;;  %p1361_p8 = scmp.ne.s32.totalorder %s1564_s2, %s1360_s15  ;;  %s34_s12 = int_to_ptr.vmem [resolvable:$true] %s33_s12 }
  0x15   :  { %p1364_p9 = scmp.lt.u32.totalorder %s1360_s15, %s1564_s2 }
  0x17   :  { %p1366_p10 = pnand %p1364_p9, %p1361_p8 }
  0x19   :  { %1369 = shalt.err (!%p1366_p10)
}
  0x1a   :  { %s1370_s20 = scalar_lea.vmem %s34_s12, 8192  ;;  %p1375_p12 = scmp.lt.s32.totalorder %s34_s12, %s34_s12 }
  0x1b   :  { %p1371_p11 = scmp.ne.s32.totalorder %s34_s12, %s1370_s20  ;;  %p1376_p13 = scmp.lt.s32.totalorder %s1370_s20, %s1370_s20 }
  0x1d   :  { %p1377_p0 = por %p1376_p13, %p1375_p12 }
  0x1f   :  { %p1378_p1 = pnand %p1377_p0, %p1371_p11 }
  0x21   :  { %1381 = shalt.err (!%p1378_p1)
}
  0x22   :  { %s1414_s1 = smov 64   ;;  %s1415_s21 = smov 4  }
  0x23   :  { %39 = dma.hbm_to_vmem [thread:$0]  %s1564_s2, 8192, %s34_s12, [#allocation7], %s1414_s1, %s1414_s1, %s1415_s21  }
  0x24   :  { %1404 = dma.done.wait [#allocation4], 1024  }
  0x25   :  { %1405 = vsyncadd [#allocation4], 4294966272 }
  0x26   :  { %1406 = dma.done.wait [#allocation7], 8192  }
  0x27   :  { %1407 = vsyncadd [#allocation7], 4294959104  ;;  %v1246_v0 = vld [vmem:[#allocation6 + $0x40] sm:$0xff]   ;;  %v1250_v4 = vld [vmem:[#allocation6 + $0x48] sm:$0xff]   ;;  %vm930_vm6 = vcmask 7168   ;;  %s1418_s30 = smov [#allocation8]  }
  0x28   :  { %v1247_v1 = vld [vmem:[#allocation6 + $0xc0] sm:$0xff]   ;;  %1143 = vmatprep.subr.bf16.mxu0 %v1246_v0  ;;  %v1251_v5 = vld [vmem:[#allocation6 + $0xc8] sm:$0xff]   ;;  %v1254_v8 = vld [vmem:[#allocation6 + $0x50] sm:$0xff]   ;;  %s1039_s7 = sshll.u32 %s1418_s30, 4  ;;  %s1040_s7 = int_to_ptr.vmem [resolvable:$true] %s1039_s7 }
  0x29   :  { %v1248_v2 = vld [vmem:[#allocation6] sm:$0xff]   ;;  %1165 = vmatprep.subr.bf16.mxu1 %v1247_v1  ;;  %v1252_v6 = vld [vmem:[#allocation6 + $0x8] sm:$0xff]   ;;  %v1255_v9 = vld [vmem:[#allocation6 + $0xd0] sm:$0xff]   ;;  %s1382_s9 = scalar_lea.vmem %s1040_s7, 128  ;;  %p1387_p3 = scmp.lt.s32.totalorder %s1040_s7, %s1040_s7 }
  0x2a   :  { %v1249_v3 = vld [vmem:[#allocation6 + $0x80] sm:$0xff]   ;;  %1144 = vmatpush3.bf16.msra.mxu0 %v1248_v2  ;;  %v1253_v7 = vld [vmem:[#allocation6 + $0x88] sm:$0xff]   ;;  %v1256_v10 = vld [vmem:[#allocation6 + $0x10] sm:$0xff]   ;;  %p1383_p2 = scmp.ne.s32.totalorder %s1040_s7, %s1382_s9  ;;  %p1388_p4 = scmp.lt.s32.totalorder %s1382_s9, %s1382_s9 }
  0x2b   :  { %1166 = vmatpush3.bf16.msra.mxu1 %v1249_v3  ;;  %1145 = vmatprep.subr.bf16.mxu0 %v1250_v4  ;;  %v1257_v11 = vld [vmem:[#allocation6 + $0x90] sm:$0xff]   ;;  %v1258_v12 = vld [vmem:[#allocation6 + $0x58] sm:$0xff]   ;;  %v1262_v16 = vld [vmem:[#allocation6 + $0x60] sm:$0xff]   ;;  %v869_v3 = vlaneseq }
  0x2c   :  { %1167 = vmatprep.subr.bf16.mxu1 %v1251_v5  ;;  %v1259_v13 = vld [vmem:[#allocation6 + $0xd8] sm:$0xff]   ;;  %v1263_v17 = vld [vmem:[#allocation6 + $0xe0] sm:$0xff]   ;;  %v1266_v20 = vld [vmem:[#allocation6 + $0x68] sm:$0xff]   ;;  %p1389_p5 = por %p1388_p4, %p1387_p3 }
  0x2d   :  { %v1260_v14 = vld [vmem:[#allocation6 + $0x18] sm:$0xff]   ;;  %v1264_v18 = vld [vmem:[#allocation6 + $0x20] sm:$0xff]   ;;  %v1267_v21 = vld [vmem:[#allocation6 + $0xe8] sm:$0xff]  }
  0x2e   :  { %1146 = vmatpush3.bf16.msra.mxu0 %v1252_v6  ;;  %v1261_v15 = vld [vmem:[#allocation6 + $0x98] sm:$0xff]   ;;  %v1265_v19 = vld [vmem:[#allocation6 + $0xa0] sm:$0xff]   ;;  %v1268_v22 = vld [vmem:[#allocation6 + $0x28] sm:$0xff]   ;;  %p1390_p6 = pnand %p1389_p5, %p1383_p2 }
  0x2f   :  { %1168 = vmatpush3.bf16.msra.mxu1 %v1253_v7  ;;  %1147 = vmatprep.subr.bf16.mxu0 %v1254_v8  ;;  %v1269_v23 = vld [vmem:[#allocation6 + $0xa8] sm:$0xff]   ;;  %v1270_v24 = vld [vmem:[#allocation6 + $0x70] sm:$0xff]   ;;  %v1274_v28 = vld [vmem:[#allocation6 + $0x78] sm:$0xff]   ;;  %v1479_v8 = vand.u32 127, %v869_v3 }
  0x30   :  { %1169 = vmatprep.subr.bf16.mxu1 %v1255_v9  ;;  %v1271_v25 = vld [vmem:[#allocation6 + $0xf0] sm:$0xff]   ;;  %v1275_v29 = vld [vmem:[#allocation6 + $0xf8] sm:$0xff]   ;;  %v126_v32 = vld [vmem:[#allocation3] sm:$0xff] }
  0x31   :  { %v1272_v26 = vld [vmem:[#allocation6 + $0x30] sm:$0xff]   ;;  %v1276_v30 = vld [vmem:[#allocation6 + $0x38] sm:$0xff]   ;;  %v130_v33 = vld [vmem:[#allocation3 + $0x20] sm:$0xff]  ;;  %vm871_vm0 = vcmp.lt.s32.totalorder %v1479_v8, 16  ;;  %vm1026_vm8 = vcmp.eq.s32.totalorder %v1479_v8, 1  ;;  %vm1024_vm9 = vcmp.eq.s32.totalorder %v1479_v8, 0 }
  0x32   :  { %1148 = vmatpush3.bf16.msra.mxu0 %v1256_v10  ;;  %v1273_v27 = vld [vmem:[#allocation6 + $0xb0] sm:$0xff]   ;;  %v1277_v31 = vld [vmem:[#allocation6 + $0xb8] sm:$0xff]   ;;  %v127_v34 = vld [vmem:[#allocation3 + $0x8] sm:$0xff]  ;;  %v1062_v35 = vcombine.low %v126_v32, %v130_v33  ;;  %v1063_v36 = vcombine.high %v126_v32, %v130_v33 }
  0x33   :  { %1170 = vmatpush3.bf16.msra.mxu1 %v1257_v11  ;;  %1149 = vmatprep.subr.bf16.mxu0 %v1258_v12  ;;  %v131_v37 = vld [vmem:[#allocation3 + $0x28] sm:$0xff]  ;;  %v1278_v40 = vld [vmem:[#allocation6 + $0x140] sm:$0xff]   ;;  %v1286_v48 = vld [vmem:[#allocation6 + $0x150] sm:$0xff]  }
  0x34   :  { %1171 = vmatprep.subr.bf16.mxu1 %v1259_v13  ;;  %v1064_v38 = vcombine.low %v127_v34, %v131_v37  ;;  %v1065_v39 = vcombine.high %v127_v34, %v131_v37  ;;  %718 = vmatprep.mubr.bf16.mxu0 %v1063_v36  ;;  %v1279_v41 = vld [vmem:[#allocation6 + $0x1c0] sm:$0xff]   ;;  %v1282_v44 = vld [vmem:[#allocation6 + $0x148] sm:$0xff]   ;;  %v1287_v49 = vld [vmem:[#allocation6 + $0x1d0] sm:$0xff]  }
  0x35   :  { %v1280_v42 = vld [vmem:[#allocation6 + $0x100] sm:$0xff]   ;;  %v1283_v45 = vld [vmem:[#allocation6 + $0x1c8] sm:$0xff]   ;;  %v1288_v50 = vld [vmem:[#allocation6 + $0x110] sm:$0xff]  }
  0x36   :  { %1150 = vmatpush3.bf16.msra.mxu0 %v1260_v14  ;;  %759 = vmatprep.mubr.bf16.mxu1 %v1065_v39  ;;  %v1281_v43 = vld [vmem:[#allocation6 + $0x180] sm:$0xff]   ;;  %v1284_v46 = vld [vmem:[#allocation6 + $0x108] sm:$0xff]   ;;  %v1289_v51 = vld [vmem:[#allocation6 + $0x190] sm:$0xff]  }
  0x37   :  { %1172 = vmatpush3.bf16.msra.mxu1 %v1261_v15  ;;  %1151 = vmatprep.subr.bf16.mxu0 %v1262_v16  ;;  %v1285_v47 = vld [vmem:[#allocation6 + $0x188] sm:$0xff]   ;;  %v1290_v52 = vld [vmem:[#allocation6 + $0x158] sm:$0xff]   ;;  %v1294_v56 = vld [vmem:[#allocation6 + $0x160] sm:$0xff]  }
  0x38   :  { %1173 = vmatprep.subr.bf16.mxu1 %v1263_v17  ;;  %v1291_v53 = vld [vmem:[#allocation6 + $0x1d8] sm:$0xff]   ;;  %v1295_v57 = vld [vmem:[#allocation6 + $0x1e0] sm:$0xff]   ;;  %v1298_v60 = vld [vmem:[#allocation6 + $0x168] sm:$0xff]  }
  0x39   :  { %v1292_v54 = vld [vmem:[#allocation6 + $0x118] sm:$0xff]   ;;  %v1296_v58 = vld [vmem:[#allocation6 + $0x120] sm:$0xff]   ;;  %v1299_v61 = vld [vmem:[#allocation6 + $0x1e8] sm:$0xff]  }
  0x3a   :  { %1152 = vmatpush3.bf16.msra.mxu0 %v1264_v18  ;;  %v1293_v55 = vld [vmem:[#allocation6 + $0x198] sm:$0xff]   ;;  %v1297_v59 = vld [vmem:[#allocation6 + $0x1a0] sm:$0xff]   ;;  %v1300_v62 = vld [vmem:[#allocation6 + $0x128] sm:$0xff]  }
  0x3b   :  { %1174 = vmatpush3.bf16.msra.mxu1 %v1265_v19  ;;  %1153 = vmatprep.subr.bf16.mxu0 %v1266_v20  ;;  %v1301_v63 = vld [vmem:[#allocation6 + $0x1a8] sm:$0xff]   ;;  %v1302_v0 = vld [vmem:[#allocation6 + $0x170] sm:$0xff]   ;;  %v1306_v5 = vld [vmem:[#allocation6 + $0x178] sm:$0xff]  }
  0x3c   :  { %1175 = vmatprep.subr.bf16.mxu1 %v1267_v21  ;;  %v1303_v1 = vld [vmem:[#allocation6 + $0x1f0] sm:$0xff]   ;;  %v1307_v6 = vld [vmem:[#allocation6 + $0x1f8] sm:$0xff]   ;;  %v1140_v16 = vld [vmem:[%s1567_s5] sm:$0xff]  }
  0x3d   :  { %v1304_v2 = vld [vmem:[#allocation6 + $0x130] sm:$0xff]   ;;  %v1308_v7 = vld [vmem:[#allocation6 + $0x138] sm:$0xff]   ;;  %v1141_v19 = vunpack.c.l.bf16 %v1140_v16  ;;  %v1142_v20 = vunpack.c.h.bf16 %v1140_v16 }
  0x3e   :  { %1154 = vmatpush3.bf16.msra.mxu0 %v1268_v22  ;;  %v1305_v4 = vld [vmem:[#allocation6 + $0x1b0] sm:$0xff]   ;;  %v1309_v9 = vld [vmem:[#allocation6 + $0x1b8] sm:$0xff]  }
  0x3f   :  { %1176 = vmatpush3.bf16.msra.mxu1 %v1269_v23  ;;  %1155 = vmatprep.subr.bf16.mxu0 %v1270_v24  ;;  %v128_v10 = vld [vmem:[#allocation3 + $0x10] sm:$0xff]  ;;  %v129_v14 = vld [vmem:[#allocation3 + $0x18] sm:$0xff]  ;;  %v943_v21 = vmul.f32 0.5, %v1141_v19  ;;  %v944_v22 = vmul.f32 0.5, %v1142_v20  ;;  %v1488_v23 = vld [vmem:[%s1566_s4] sm:$0xff]   ;;  %v1416_v20 = vmov 0  }
  0x40   :  { %1177 = vmatprep.subr.bf16.mxu1 %v1271_v25  ;;  %v132_v11 = vld [vmem:[#allocation3 + $0x30] sm:$0xff]  ;;  %v133_v15 = vld [vmem:[#allocation3 + $0x38] sm:$0xff]  ;;  %1245 = vset.pattern.permute.xlu1 %v1416_v20 }
  0x41   :  { %v1066_v12 = vcombine.low %v128_v10, %v132_v11  ;;  %v1067_v13 = vcombine.high %v128_v10, %v132_v11  ;;  %v1068_v17 = vcombine.low %v129_v14, %v133_v15  ;;  %v1069_v18 = vcombine.high %v129_v14, %v133_v15  ;;  %1244 = vset.pattern.permute.xlu0 %v1416_v20 }
  0x42   :  { %1156 = vmatpush3.bf16.msra.mxu0 %v1272_v26  ;;  %v945_v24 = vsel %vm871_vm0, %v943_v21, -1e+30  ;;  %v946_v25 = vsel %vm871_vm0, %v944_v22, -1e+30  ;;  %v1138_v26 = vunpack.c.h.bf16 %v1488_v23  ;;  %v1137_v15 = vunpack.c.l.bf16 %v1488_v23 }
  0x43   :  { %1178 = vmatpush3.bf16.msra.mxu1 %v1273_v27  ;;  %1157 = vmatprep.subr.bf16.mxu0 %v1274_v28 }
  0x44   :  { %1179 = vmatprep.subr.bf16.mxu1 %v1275_v29  ;;  %947 = vmax.xlane.f32.xlu1 %v945_v24  ;;  %v885_v27 = vsel %vm871_vm0, %v1138_v26, -1e+30 }
  0x46   :  { %1158 = vmatpush3.bf16.msra.mxu0 %v1276_v30 }
  0x47   :  { %1180 = vmatpush3.bf16.msra.mxu1 %v1277_v31  ;;  %1187 = vmatprep.subr.bf16.mxu0 %v1278_v40 }
  0x48   :  { %1209 = vmatprep.subr.bf16.mxu1 %v1279_v41  ;;  %949 = vmax.xlane.f32.xlu1 %v946_v25 }
  0x49   :  { %719 = vmatmul.mubr.bf16.vlgmr.msra.gmra.mrb[0].mxu0 %v1062_v35 }
  0x4a   :  { %760 = vmatmul.mubr.bf16.vlgmr.msra.gmra.mrb[0].mxu1 %v1064_v38  ;;  %1188 = vmatpush3.bf16.msra.mxu0 %v1280_v42 }
  0x4b   :  { %1210 = vmatpush3.bf16.msra.mxu1 %v1281_v43  ;;  %1189 = vmatprep.subr.bf16.mxu0 %v1282_v44 }
  0x4c   :  { %1211 = vmatprep.subr.bf16.mxu1 %v1283_v45  ;;  %800 = vmatprep.mubr.bf16.mxu0 %v1067_v13 }
  0x4d   :  { %841 = vmatprep.mubr.bf16.mxu1 %v1069_v18  ;;  %888 = vmax.xlane.f32.xlu1 %v885_v27 }
  0x4e   :  { %1190 = vmatpush3.bf16.msra.mxu0 %v1284_v46 }
  0x4f   :  { %1212 = vmatpush3.bf16.msra.mxu1 %v1285_v47  ;;  %1191 = vmatprep.subr.bf16.mxu0 %v1286_v48 }
  0x50   :  { %1213 = vmatprep.subr.bf16.mxu1 %v1287_v49 }
  0x52   :  { %1192 = vmatpush3.bf16.msra.mxu0 %v1288_v50 }
  0x53   :  { %1214 = vmatpush3.bf16.msra.mxu1 %v1289_v51  ;;  %1193 = vmatprep.subr.bf16.mxu0 %v1290_v52 }
  0x54   :  { %1215 = vmatprep.subr.bf16.mxu1 %v1291_v53 }
  0x56   :  { %1194 = vmatpush3.bf16.msra.mxu0 %v1292_v54 }
  0x57   :  { %1216 = vmatpush3.bf16.msra.mxu1 %v1293_v55  ;;  %1195 = vmatprep.subr.bf16.mxu0 %v1294_v56 }
  0x58   :  { %1217 = vmatprep.subr.bf16.mxu1 %v1295_v57 }
  0x5a   :  { %1196 = vmatpush3.bf16.msra.mxu0 %v1296_v58 }
  0x5b   :  { %1218 = vmatpush3.bf16.msra.mxu1 %v1297_v59  ;;  %1197 = vmatprep.subr.bf16.mxu0 %v1298_v60 }
  0x5c   :  { %1219 = vmatprep.subr.bf16.mxu1 %v1299_v61 }
  0x5e   :  { %1198 = vmatpush3.bf16.msra.mxu0 %v1300_v62 }
  0x5f   :  { %1220 = vmatpush3.bf16.msra.mxu1 %v1301_v63  ;;  %1199 = vmatprep.subr.bf16.mxu0 %v1302_v0 }
  0x60   :  { %1221 = vmatprep.subr.bf16.mxu1 %v1303_v1 }
  0x62   :  { %1200 = vmatpush3.bf16.msra.mxu0 %v1304_v2 }
  0x63   :  { %1222 = vmatpush3.bf16.msra.mxu1 %v1305_v4  ;;  %1201 = vmatprep.subr.bf16.mxu0 %v1306_v5  ;;  %v1061_v5 = vld [vmem:[%s1565_s3] ss:$0 sm:$0xff] }
  0x64   :  { %1223 = vmatprep.subr.bf16.mxu1 %v1307_v6 }
  0x66   :  { %1202 = vmatpush3.bf16.msra.mxu0 %v1308_v7 }
  0x67   :  { %1224 = vmatpush3.bf16.msra.mxu1 %v1309_v9 }
  0x69   :  { %801 = vmatmul.mubr.bf16.vlgmr.msra.gmra.mrb[4].mxu0 %v1066_v12 }
  0x6a   :  { %842 = vmatmul.mubr.bf16.vlgmr.msra.gmra.mrb[4].mxu1 %v1068_v17  ;;  %v884_v17 = vsel %vm871_vm0, %v1137_v15, -1e+30 }
  0xd1   :  { %v948_v28 = vpop.xlane.xlu1 %947 }
  0xd2   :  { %v1507_v54 = vsub.f32 %v945_v24, %v948_v28 }
  0xd4   :  { %v953_v2 = vmul.f32 1.442695, %v1507_v54 }
  0xd5   :  { %v950_v29 = vpop.xlane.xlu1 %949 }
  0xd6   :  { %v1497_v30 = vsub.f32 %v946_v25, %v950_v29 }
  0xd8   :  { %v955_v31 = vmul.f32 1.442695, %v1497_v30 }
  0xda   :  { %v889_v32 = vpop.xlane.xlu1 %888  ;;  %1310 = vpow2.f32 %v955_v31 }
  0xdb   :  { %v1500_v33 = vsub.f32 %v885_v27, %v889_v32 }
  0xdd   :  { %v894_v34 = vmul.f32 1.442695, %v1500_v33 }
  0xdf   :  { %1312 = vpow2.f32 %v894_v34 }
  0xe0   :  { %1314 = vpow2.f32 %v953_v2 }
  0xe4   :  { %v1311_v35 = vpop.eup %1310 }
  0xe5   :  { %v958_v36 = vsel %vm871_vm0, %v1311_v35, 0.0 }
  0xe6   :  { %961 = vadd.xlane.f32.xlu1 %v958_v36 }
  0xe9   :  { %v1313_v37 = vpop.eup %1312 }
  0xea   :  { %v897_v38 = vsel %vm871_vm0, %v1313_v37, 0.0  ;;  %v1315_v18 = vpop.eup %1314 }
  0xeb   :  { %900 = vadd.xlane.f32.xlu1 %v897_v38  ;;  %v957_v19 = vsel %vm871_vm0, %v1315_v18, 0.0  ;;  %v868_v38 = vld [vmem:[%s1562_s0 + $0x8] sm:$0xff] }
 0x11c   :  { %v1159_v39 = vpop.f32.mrb[0].mxu0 }
 0x11d   :  { %v1181_v40 = vpop.f32.mrb[0].mxu1  ;;  %v1160_v41 = vpop.f32.mrb[1].mxu0 }
 0x11e   :  { %v1161_v42 = vadd.f32 %v1160_v41, %v1159_v39  ;;  %v1182_v43 = vpop.f32.mrb[1].mxu1  ;;  %v1162_v44 = vpop.f32.mrb[2].mxu0  ;;  %v867_v39 = vld [vmem:[%s1562_s0] sm:$0xff] }
 0x11f   :  { %v1183_v45 = vadd.f32 %v1182_v43, %v1181_v40  ;;  %v1184_v46 = vpop.f32.mrb[2].mxu1  ;;  %v1163_v47 = vpop.f32.mrb[3].mxu0 }
 0x120   :  { %v1164_v48 = vadd.f32 %v1163_v47, %v1162_v44  ;;  %v1185_v49 = vpop.f32.mrb[3].mxu1 }
 0x121   :  { %v762_v50 = vadd.f32 %v1183_v45, %v1161_v42  ;;  %v1186_v51 = vadd.f32 %v1185_v49, %v1184_v46  ;;  %v1417_v49 = vmov 0.0  }
 0x123   :  { %v765_v52 = vadd.f32 %v1186_v51, %v1164_v48 }
 0x13c   :  { %v1203_v53 = vpop.f32.mrb[4].mxu0 }
 0x13d   :  { %v1225_v55 = vpop.f32.mrb[4].mxu1  ;;  %v1204_v56 = vpop.f32.mrb[5].mxu0 }
 0x13e   :  { %v1205_v57 = vadd.f32 %v1204_v56, %v1203_v53  ;;  %v1226_v58 = vpop.f32.mrb[5].mxu1  ;;  %v1206_v59 = vpop.f32.mrb[6].mxu0 }
 0x13f   :  { %v1227_v60 = vadd.f32 %v1226_v58, %v1225_v55  ;;  %v1228_v61 = vpop.f32.mrb[6].mxu1  ;;  %v1207_v62 = vpop.f32.mrb[7].mxu0 }
 0x140   :  { %v803_v63 = vadd.f32 %v1205_v57, %v762_v50  ;;  %v1208_v0 = vadd.f32 %v1207_v62, %v1206_v59  ;;  %v1229_v1 = vpop.f32.mrb[7].mxu1 }
 0x141   :  { %v1230_v4 = vadd.f32 %v1229_v1, %v1228_v61 }
 0x142   :  { %v844_v6 = vadd.f32 %v1227_v60, %v803_v63  ;;  %v806_v7 = vadd.f32 %v1208_v0, %v765_v52 }
 0x144   :  { %v847_v9 = vadd.f32 %v1230_v4, %v806_v7  ;;  %v850_v10 = vadd.f32 %v1061_v5, %v844_v6 }
 0x146   :  { %v969_v11 = vmul.f32 0.5, %v850_v10  ;;  %v851_v12 = vadd.f32 %v1061_v5, %v847_v9 }
 0x148   :  { %v971_v13 = vsel %vm871_vm0, %v969_v11, -1e+30  ;;  %v970_v14 = vmul.f32 0.5, %v851_v12 }
 0x149   :  { %973 = vmax.xlane.f32.xlu0 %v971_v13 }
 0x14a   :  { %v972_v16 = vsel %vm871_vm0, %v970_v14, -1e+30 }
 0x14d   :  { %975 = vmax.xlane.f32.xlu0 %v972_v16 }
 0x151   :  { %886 = vmax.xlane.f32.xlu0 %v884_v17 }
 0x155   :  { %959 = vadd.xlane.f32.xlu0 %v957_v19  ;;  %v873_v19 = vshrl.u32 %v869_v3, 7 }
 0x157   :  { %vm878_vm5 = vcmp.lt.s32.totalorder %v873_v19, 2  ;;  %vm1023_vm7 = vcmp.eq.s32.totalorder %v873_v19, 0 }
 0x158   :  { %vm1027_vm10 = vmand %vm1023_vm7, %vm1026_vm8 }
 0x159   :  { %vm1025_vm11 = vmand %vm1023_vm7, %vm1024_vm9 }
 0x173   :  { %v962_v40 = vpop.xlane.xlu1 %961 }
 0x178   :  { %v901_v41 = vpop.xlane.xlu1 %900 }
 0x1d6   :  { %v974_v21 = vpop.xlane.xlu0 %973 }
 0x1d7   :  { %v977_v23 = vsub.f32 %v971_v13, %v974_v21  ;;  %v1134_v21 = vsel %vm878_vm5, 1.0, %v1417_v49 }
 0x1d9   :  { %v979_v28 = vmul.f32 1.442695, %v977_v23 }
 0x1da   :  { %v976_v22 = vpop.xlane.xlu0 %975 }
 0x1db   :  { %v978_v24 = vsub.f32 %v972_v16, %v976_v22 }
 0x1dd   :  { %v981_v25 = vmul.f32 1.442695, %v978_v24 }
 0x1de   :  { %v887_v26 = vpop.xlane.xlu0 %886 }
 0x1df   :  { %1316 = vpow2.f32 %v981_v25  ;;  %v890_v27 = vsub.f32 %v884_v17, %v887_v26 }
 0x1e1   :  { %v892_v29 = vmul.f32 1.442695, %v890_v27 }
 0x1e2   :  { %v960_v43 = vpop.xlane.xlu0 %959 }
 0x1e3   :  { %1318 = vpow2.f32 %v892_v29 }
 0x1e4   :  { %1320 = vpow2.f32 %v979_v28 }
 0x1e5   :  { %1322 = vlog2.f32 %v901_v41 }
 0x1e9   :  { %v1317_v31 = vpop.eup %1316 }
 0x1ea   :  { %v984_v32 = vsel %vm871_vm0, %v1317_v31, 0.0 }
 0x1eb   :  { %987 = vadd.xlane.f32.xlu1 %v984_v32 }
 0x1ed   :  { %v1319_v34 = vpop.eup %1318 }
 0x1ee   :  { %v896_v35 = vsel %vm871_vm0, %v1319_v34, 0.0  ;;  %v1321_v36 = vpop.eup %1320 }
 0x1ef   :  { %898 = vadd.xlane.f32.xlu0 %v896_v35  ;;  %v983_v37 = vsel %vm871_vm0, %v1321_v36, 0.0  ;;  %v1323_v42 = vpop.eup %1322 }
 0x1f0   :  { %v905_v45 = vmul.f32 0.6931472, %v1323_v42 }
 0x1f2   :  { %v907_v48 = vsub.f32 %v1500_v33, %v905_v45 }
 0x1f3   :  { %985 = vadd.xlane.f32.xlu0 %v983_v37 }
 0x1fc   :  { %912 = vperm.xlu1 %1245, %v868_v38  }
 0x209   :  { %909 = vperm.xlu0 %1244, %v867_v39  }
 0x278   :  { %v988_v44 = vpop.xlane.xlu1 %987 }
 0x279   :  { %1324 = vlog2.f32 %v988_v44 }
 0x27c   :  { %v913_v46 = vpop.permute.xlu1 %912  ;;  %v899_v47 = vpop.xlane.xlu0 %898 }
 0x27d   :  { %vm915_vm1 = vcmp.eq.s32.totalorder %v1479_v8, %v913_v46  ;;  %1326 = vlog2.f32 %v899_v47 }
 0x27e   :  { %vm917_vm2 = vmand %vm915_vm1, %vm871_vm0 }
 0x27f   :  { %v919_v50 = vsel %vm917_vm2, 1.0, %v1417_v49 }
 0x280   :  { %v986_v51 = vpop.xlane.xlu0 %985  ;;  %v921_v52 = vmul.f32 %v919_v50, %v907_v48 }
 0x281   :  { %1328 = vlog2.f32 %v986_v51 }
 0x282   :  { %924 = vadd.xlane.f32.xlu0 %v921_v52  ;;  %1330 = vlog2.f32 %v960_v43 }
 0x283   :  { %v1325_v53 = vpop.eup %1324  ;;  %1332 = vlog2.f32 %v962_v40 }
 0x284   :  { %v992_v55 = vmul.f32 0.6931472, %v1325_v53 }
 0x286   :  { %v994_v59 = vsub.f32 %v978_v24, %v992_v55 }
 0x287   :  { %v1327_v56 = vpop.eup %1326 }
 0x288   :  { %v903_v57 = vmul.f32 0.6931472, %v1327_v56  ;;  %v910_v58 = vpop.permute.xlu0 %909  ;;  %v997_v0 = vmul.f32 1.442695, %v994_v59 }
 0x289   :  { %vm914_vm3 = vcmp.eq.s32.totalorder %v1479_v8, %v910_v58 }
 0x28a   :  { %vm916_vm4 = vmand %vm914_vm3, %vm871_vm0  ;;  %v906_v33 = vsub.f32 %v890_v27, %v903_v57  ;;  %1334 = vpow2.f32 %v997_v0 }
 0x28b   :  { %v1329_v60 = vpop.eup %1328  ;;  %v918_v61 = vsel %vm916_vm4, 1.0, %v1417_v49 }
 0x28c   :  { %v990_v62 = vmul.f32 0.6931472, %v1329_v60  ;;  %v920_v63 = vmul.f32 %v918_v61, %v906_v33  ;;  %v1331_v4 = vpop.eup %1330 }
 0x28d   :  { %v1333_v5 = vpop.eup %1332  ;;  %v964_v6 = vmul.f32 0.6931472, %v1331_v4 }
 0x28e   :  { %v993_v1 = vsub.f32 %v977_v23, %v990_v62  ;;  %922 = vadd.xlane.f32.xlu1 %v920_v63  ;;  %v966_v7 = vmul.f32 0.6931472, %v1333_v5 }
 0x28f   :  { %v967_v9 = vsub.f32 %v1507_v54, %v964_v6 }
 0x290   :  { %v995_v2 = vmul.f32 1.442695, %v993_v1  ;;  %v968_v11 = vsub.f32 %v1497_v30, %v966_v7 }
 0x291   :  { %v999_v12 = vsub.f32 %v993_v1, %v967_v9 }
 0x292   :  { %1336 = vpow2.f32 %v995_v2  ;;  %v1000_v15 = vsub.f32 %v994_v59, %v968_v11 }
 0x294   :  { %v1335_v10 = vpop.eup %1334 }
 0x295   :  { %v1002_v17 = vmul.f32 %v1335_v10, %v1000_v15 }
 0x297   :  { %v1004_v18 = vsel %vm871_vm0, %v1002_v17, 0.0 }
 0x29c   :  { %v1337_v13 = vpop.eup %1336 }
 0x29d   :  { %v1001_v14 = vmul.f32 %v1337_v13, %v999_v12 }
 0x29f   :  { %v1003_v16 = vsel %vm871_vm0, %v1001_v14, 0.0 }
 0x2a0   :  { %1005 = vadd.xlane.f32.xlu1 %v1003_v16 }
 0x2a4   :  { %1007 = vadd.xlane.f32.xlu1 %v1004_v18 }
 0x30f   :  { %v925_v20 = vpop.xlane.xlu0 %924 }
 0x310   :  { %v927_v54 = vsub.f32 0.0, %v925_v20 }
 0x312   :  { %v929_v22 = vmul.f32 0.0, %v927_v54 }
 0x314   :  { %v932_v25 = vsel %vm930_vm6, %v929_v22, 0.0 }
 0x31b   :  { %v923_v30 = vpop.xlane.xlu1 %922 }
 0x31c   :  { %v926_v24 = vsub.f32 0.0, %v923_v30 }
 0x31e   :  { %v928_v23 = vmul.f32 %v1134_v21, %v926_v24 }
 0x320   :  { %v931_v26 = vsel %vm930_vm6, %v928_v23, 0.0 }
 0x321   :  { %v933_v27 = vadd.f32 %v932_v25, %v931_v26 }
 0x323   :  { %934 = vadd.xlane.f32.xlu1 %v933_v27 }
 0x32d   :  { %v1006_v28 = vpop.xlane.xlu1 %1005 }
 0x32e   :  { %v1009_v29 = vmul.f32 %v1134_v21, %v1006_v28 }
 0x330   :  { %v1011_v34 = vsel %vm930_vm6, %v1009_v29, 0.0 }
 0x331   :  { %v1008_v31 = vpop.xlane.xlu1 %1007 }
 0x332   :  { %v1010_v32 = vmul.f32 0.0, %v1008_v31 }
 0x334   :  { %v1012_v35 = vsel %vm930_vm6, %v1010_v32, 0.0 }
 0x335   :  { %v1013_v3 = vadd.f32 %v1012_v35, %v1011_v34 }
 0x337   :  { %1014 = vadd.xlane.f32.xlu1 %v1013_v3 }
 0x3b0   :  { %v935_v36 = vpop.xlane.xlu1 %934 }
 0x3b1   :  { %v936_v37 = vrot.slane %v935_v36, 4 }
 0x3b3   :  { %v937_v38 = vadd.f32 %v936_v37, %v935_v36 }
 0x3b5   :  { %v938_v39 = vrot.slane %v937_v38, 2 }
 0x3b7   :  { %v939_v40 = vadd.f32 %v938_v39, %v937_v38 }
 0x3b9   :  { %v940_v41 = vrot.slane %v939_v40, 1 }
 0x3bb   :  { %v941_v42 = vadd.f32 %v940_v41, %v939_v40 }
 0x3bd   :  { %1231 = vpush %v941_v42 }
 0x3c4   :  { %v1015_v43 = vpop.xlane.xlu1 %1014 }
 0x3c5   :  { %v1016_v44 = vrot.slane %v1015_v43, 4 }
 0x3c7   :  { %v1017_v45 = vadd.f32 %v1016_v44, %v1015_v43 }
 0x3c9   :  { %v1018_v46 = vrot.slane %v1017_v45, 2 }
 0x3cb   :  { %v1019_v47 = vadd.f32 %v1018_v46, %v1017_v45 }
 0x3cd   :  { %v1020_v48 = vrot.slane %v1019_v47, 1 }
 0x3cf   :  { %v1021_v49 = vadd.f32 %v1020_v48, %v1019_v47 }
 0x3d1   :  { %1233 = vpush %v1021_v49 }
 0x3ee   :  { %s1232_s0 = spop %1231 }
 0x3ef   :  { %v1030_v51 = vstv %s1232_s0 }
 0x402   :  { %s1234_s8 = spop %1233 }
 0x403   :  { %v1028_v50 = vstv %s1234_s8 }
 0x404   :  { %v1029_v52 = vsel %vm1027_vm10, %v1028_v50, 0.0 }
 0x405   :  { %v1031_v53 = vsel %vm1025_vm11, %v1030_v51, %v1029_v52 }
 0x406   :  { %1032 = vst [vmem:[#allocation8] sm:$0xff] %v1031_v53 }
 0x407   :  { %1393 = shalt.err (!%p1390_p6)
}
 0x408   :  { %s1394_s12 = scalar_lea.hbm %s1568_s6, 128 }
 0x409   :  { %p1395_p7 = scmp.ne.s32.totalorder %s1568_s6, %s1394_s12  ;;  %p1398_p8 = scmp.lt.u32.totalorder %s1394_s12, %s1568_s6 }
 0x40b   :  { %p1400_p9 = pnand %p1398_p8, %p1395_p7 }
 0x40d   :  { %1403 = shalt.err (!%p1400_p9)
}
 0x40e   :  { %1042 = dma.vmem_to_hbm [thread:$0]  %s1040_s7, 128, %s1568_s6, [#allocation5]  }
 0x40f   :  { %1408 = dma.done.wait [#allocation5], 128  }
 0x410   :  { %1409 = vsyncadd [#allocation5], 4294967168 }
 0x411   :  { %1046 = vsyncpa [#allocation4], 1 }
 0x412   :  { %1047 = vsyncpa [#allocation7], 1 }
 0x413   :  { %1048 = vsyncpa [#allocation5], 1 }

</bundles_post_ra>
